<compile_context>
chip_gen: v6e
topology: v6e:2x2x1
jax: 0.10.0
libtpu: 0.0.40
codegen_flags: <defaults>
</compile_context>

<pallas_src>
import functools

import jax
import jax.numpy as jnp
from jax.experimental import pallas as pl
from jax.experimental.pallas import tpu as pltpu


def _round_up(x: int, m: int) -> int:
    return (x + m - 1) // m * m


# ----------------------------------------------------------------------------
# Fused kernel.  Grid = (2 * n_att branches, num O tiles).
#   programs [0, n_att)           -> 'adding'  (no sigmoid)
#   programs [n_att, 2 * n_att)   -> 'gating'  (sigmoid)
# ----------------------------------------------------------------------------
def _fused_mlp_kernel(wte_ref, w1_ref, b1_ref, w2_ref, b2_ref, out_ref, h_ref,
                      *, n_add):
    j = pl.program_id(1)

    # First matmul + tanh: once per branch (O-tile index 0), cached in VMEM.
    @pl.when(j == 0)
    def _():
        x = wte_ref[0]                                    # (P_pad, pri)  bf16
        h_ref[...] = jnp.tanh(
            jnp.dot(x, w1_ref[0], preferred_element_type=jnp.float32)
            + b1_ref[0]                                   # (1, H)        f32
        )

    # Second matmul on the current lane-dense O tile.
    y = (
        jnp.dot(h_ref[...].astype(w2_ref.dtype), w2_ref[0],
                preferred_element_type=jnp.float32)
        + b2_ref[0]                                       # (1, tO)       f32
    )

    is_gate = pl.program_id(0) >= n_add

    @pl.when(is_gate)
    def _():
        out_ref[0] = jax.nn.sigmoid(y).astype(out_ref.dtype)

    @pl.when(jnp.logical_not(is_gate))
    def _():
        out_ref[0] = y.astype(out_ref.dtype)


def _pick_tile_o(o_pad: int, hidden: int) -> int:
    """Largest multiple of 128 dividing o_pad with <= ~8 MiB per bf16 W2 tile."""
    cap = max(128, ((8 << 20) // max(2 * hidden, 1)) // 128 * 128)
    cap = min(cap, o_pad)
    t = cap
    while o_pad % t != 0:
        t -= 128
    return t


def _vmem_estimate(p_pad, pri, hidden, tile_o):
    resident = 2 * (p_pad * pri * 2 + pri * hidden * 2 + 8 * hidden * 4)
    streamed = 2 * (hidden * tile_o * 2 + 8 * tile_o * 4 + p_pad * tile_o * 4)
    scratch = p_pad * hidden * 4
    return resident + streamed + scratch


def _run_fused(wte, w1, b1, w2, b2, *, n_att):
    """wte:(B,P_pad,pri) bf16, w1:(B,pri,H) bf16, b1:(B,1,H) f32,
       w2:(B,H,O_pad) bf16,  b2:(B,1,O_pad) f32.   B == 2*n_att."""
    B, P_pad, pri = wte.shape
    H = w1.shape[-1]
    O_pad = w2.shape[-1]
    assert B == 2 * n_att and P_pad % 8 == 0 and O_pad % 128 == 0

    tile_o = _pick_tile_o(O_pad, H)
    n_o = O_pad // tile_o

    est = _vmem_estimate(P_pad, pri, H, tile_o)
    vmem_limit = min(max(int(1.25 * est) + (2 << 20), 32 << 20), 48 << 20)

    flops = 2 * B * P_pad * (pri * H + H * O_pad)
    transcendentals = B * P_pad * H + n_att * P_pad * O_pad
    bytes_accessed = (wte.size * 2 + w1.size * 2 + w2.size * 2
                      + b1.size * 4 + b2.size * 4 + B * P_pad * O_pad * 4)

    return pl.pallas_call(
        functools.partial(_fused_mlp_kernel, n_add=n_att),
        out_shape=jax.ShapeDtypeStruct((B, P_pad, O_pad), jnp.float32),
        grid=(B, n_o),
        in_specs=[
            # Branch-resident operands: index_map constant in j -> DMA'd once
            # per branch, held in VMEM across the whole O-tile loop.
            pl.BlockSpec((1, P_pad, pri), lambda i, j: (i, 0, 0)),
            pl.BlockSpec((1, pri, H),     lambda i, j: (i, 0, 0)),
            pl.BlockSpec((1, 1, H),       lambda i, j: (i, 0, 0)),
            # Streamed, lane-dense W2 / b2 tiles (double-buffered by default;
            # switch to pipeline_mode=pl.Buffered(3) if the profile shows
            # exposed DMA on this stream).
            pl.BlockSpec((1, H, tile_o),  lambda i, j: (i, 0, j)),
            pl.BlockSpec((1, 1, tile_o),  lambda i, j: (i, 0, j)),
        ],
        out_specs=pl.BlockSpec((1, P_pad, tile_o), lambda i, j: (i, 0, j)),
        scratch_shapes=[pltpu.VMEM((P_pad, H), jnp.float32)],
        compiler_params=pltpu.CompilerParams(
            dimension_semantics=("parallel", "arbitrary"),
            vmem_limit_bytes=vmem_limit),
        cost_estimate=pl.CostEstimate(
            flops=flops, transcendentals=transcendentals,
            bytes_accessed=bytes_accessed),
    )(wte, w1, b1, w2, b2)


# ----------------------------------------------------------------------------
# Parameter construction (deterministic, synthetic).  Shapes mirror
# GatingModule.__init__.
# ----------------------------------------------------------------------------
def init_params(key, *, prompt_num, pri_dim, hidden_dim, embed_dim, layer_num,
                seg_num):
    out_dim = embed_dim * layer_num
    params = {"adding": [], "gating": []}
    scale = 0.05
    for _ in range(seg_num):
        key, *ks = jax.random.split(key, 11)
        params["adding"].append(dict(
            wte=jax.random.normal(ks[0], (prompt_num, pri_dim), jnp.float32) * scale,
            w1=jax.random.normal(ks[1], (pri_dim, hidden_dim), jnp.float32) * scale,
            b1=jax.random.normal(ks[2], (hidden_dim,), jnp.float32) * scale,
            w2=jax.random.normal(ks[3], (hidden_dim, out_dim), jnp.float32) * scale,
            b2=jax.random.normal(ks[4], (out_dim,), jnp.float32) * scale,
        ))
        params["gating"].append(dict(
            wte=jax.random.normal(ks[5], (prompt_num, pri_dim), jnp.float32) * scale,
            w1=jax.random.normal(ks[6], (pri_dim, hidden_dim), jnp.float32) * scale,
            b1=jax.random.normal(ks[7], (hidden_dim,), jnp.float32) * scale,
            w2=jax.random.normal(ks[8], (hidden_dim, out_dim), jnp.float32) * scale,
            b2=jax.random.normal(ks[9], (out_dim,), jnp.float32) * scale,
        ))
    return params


# ----------------------------------------------------------------------------
# One-time prep: stack / cast / pad the attached branches.  This is the part
# the performance review flagged as a hidden HBM pass — do it ONCE when the
# parameters (or `attach`) change, NOT on every forward call.
# ----------------------------------------------------------------------------
def stack_gating_params(params, attach, *, prompt_num, seg_num):
    if attach is None or not any(attach[:seg_num]) or prompt_num == 0:
        return None
    attached = [i for i in range(seg_num) if attach[i]]
    n_att = len(attached)
    branches = ([params["adding"][i] for i in attached]
                + [params["gating"][i] for i in attached])

    P, pri = branches[0]["wte"].shape
    H = branches[0]["w1"].shape[-1]
    O = branches[0]["w2"].shape[-1]
    P_pad = _round_up(P, 8)        # f32 sublane rule for the output block
    O_pad = _round_up(O, 128)      # lane-dense, unmasked stores

    def pad_p(x):   # (P, pri) -> (P_pad, pri)
        return jnp.pad(x, ((0, P_pad - P), (0, 0)))

    def pad_o2(x):  # (H, O) -> (H, O_pad)
        return jnp.pad(x, ((0, 0), (0, O_pad - O)))

    def pad_o1(x):  # (O,) -> (O_pad,)
        return jnp.pad(x, ((0, O_pad - O),))

    arrays = dict(
        wte=jnp.stack([pad_p(b["wte"]) for b in branches]).astype(jnp.bfloat16),
        w1=jnp.stack([b["w1"] for b in branches]).astype(jnp.bfloat16),
        b1=jnp.stack([b["b1"][None, :] for b in branches]),          # f32
        w2=jnp.stack([pad_o2(b["w2"]) for b in branches]).astype(jnp.bfloat16),
        b2=jnp.stack([pad_o1(b["b2"])[None, :] for b in branches]),  # f32
    )
    meta = dict(n_att=n_att, prompt_num=P, out_dim=O)
    return dict(arrays=arrays, meta=meta)


# ----------------------------------------------------------------------------
# Hot-path forward on pre-stacked parameters.
# ----------------------------------------------------------------------------
def gating_forward(stacked, *, layer_num, embed_dim):
    if stacked is None:
        return None
    a = stacked["arrays"]
    n_att = stacked["meta"]["n_att"]
    P = stacked["meta"]["prompt_num"]
    O = stacked["meta"]["out_dim"]

    out = _run_fused(a["wte"], a["w1"], a["b1"], a["w2"], a["b2"], n_att=n_att)
    out = out[:, :P, :O]                      # drop padding (no-op if unpadded)
    adding = out[:n_att].reshape(-1, layer_num, embed_dim)
    gating = out[n_att:].reshape(-1, layer_num, embed_dim)
    # TODO(synk): training-mode dropout (p=self.dropout) not applied; eval-mode
    # semantics (identity) are reproduced exactly.
    return adding, gating


def gating_module_forward(params, attach, *, prompt_num, seg_num, layer_num,
                          embed_dim):
    """Convenience path mirroring GatingModule.forward.  In production, call
    stack_gating_params once and reuse `gating_forward` on the hot path."""
    stacked = stack_gating_params(params, attach, prompt_num=prompt_num,
                                  seg_num=seg_num)
    if stacked is None:
        return None
    return gating_forward(stacked, layer_num=layer_num, embed_dim=embed_dim)


# ----------------------------------------------------------------------------
# Pure-JAX f32 reference for correctness checks.
# ----------------------------------------------------------------------------
def _ref_forward(params, attach, *, seg_num, layer_num, embed_dim):
    def ref_mlp(p, sigmoid):
        h = jnp.tanh(p["wte"] @ p["w1"] + p["b1"])
        y = h @ p["w2"] + p["b2"]
        return jax.nn.sigmoid(y) if sigmoid else y

    attached = [i for i in range(seg_num) if attach[i]]
    ref_add = jnp.concatenate(
        [ref_mlp(params["adding"][i], False) for i in attached], axis=0
    ).reshape(-1, layer_num, embed_dim)
    ref_gate = jnp.concatenate(
        [ref_mlp(params["gating"][i], True) for i in attached], axis=0
    ).reshape(-1, layer_num, embed_dim)
    return ref_add, ref_gate


def _check(cfg, key):
    params = init_params(
        key, prompt_num=cfg["prompt_num"], pri_dim=cfg["pri_dim"],
        hidden_dim=cfg["hidden_dim"], embed_dim=cfg["embed_dim"],
        layer_num=cfg["layer_num"], seg_num=cfg["seg_num"])

    stacked = stack_gating_params(params, cfg["attach"],
                                  prompt_num=cfg["prompt_num"],
                                  seg_num=cfg["seg_num"])
    out = gating_forward(stacked, layer_num=cfg["layer_num"],
                         embed_dim=cfg["embed_dim"])
    adding, gating = out
    jax.block_until_ready((adding, gating))

    ref_add, ref_gate = _ref_forward(
        params, cfg["attach"], seg_num=cfg["seg_num"],
        layer_num=cfg["layer_num"], embed_dim=cfg["embed_dim"])

    n_att = sum(cfg["attach"][:cfg["seg_num"]])
    assert adding.shape == (n_att * cfg["prompt_num"], cfg["layer_num"],
                            cfg["embed_dim"])
    assert gating.shape == adding.shape
    # Tolerance loosened slightly: bf16 MXU operands, f32 accumulation.
    assert jnp.allclose(adding, ref_add, atol=5e-3, rtol=1e-2), (
        float(jnp.max(jnp.abs(adding - ref_add))))
    assert jnp.allclose(gating, ref_gate, atol=5e-3, rtol=1e-2), (
        float(jnp.max(jnp.abs(gating - ref_gate))))


if __name__ == "__main__":
    key = jax.random.PRNGKey(0)

    # Main small config (aligned shapes, both segments attached).
    _check(dict(prompt_num=8, pri_dim=128, hidden_dim=128, embed_dim=32,
                layer_num=4, seg_num=2, attach=[True, True]), key)

    # Unaligned config exercising P- and O-padding + partial attach.
    _check(dict(prompt_num=10, pri_dim=128, hidden_dim=128, embed_dim=24,
                layer_num=4, seg_num=2, attach=[True, False]),
           jax.random.PRNGKey(1))

    # "None" paths mirror GatingModule.forward.
    assert gating_module_forward(
        init_params(key, prompt_num=8, pri_dim=128, hidden_dim=128,
                    embed_dim=32, layer_num=4, seg_num=2),
        [False, False], prompt_num=8, seg_num=2, layer_num=4,
        embed_dim=32) is None

    print("KERNEL_OK")
</pallas_src>

<mosaic_0001>
module attributes {stable_mosaic.version = 11 : i64} {
  func.func @_fused_mlp_kernel(%arg0: i32, %arg1: i32, %arg2: memref<1x8x128xbf16, #tpu.memory_space<vmem>>, %arg3: memref<1x128x128xbf16, #tpu.memory_space<vmem>>, %arg4: memref<1x1x128xf32, #tpu.memory_space<vmem>>, %arg5: memref<1x128x128xbf16, #tpu.memory_space<vmem>>, %arg6: memref<1x1x128xf32, #tpu.memory_space<vmem>>, %arg7: memref<1x8x128xf32, #tpu.memory_space<vmem>>, %arg8: memref<8x128xf32, #tpu.memory_space<vmem>>) attributes {dimension_semantics = [#tpu.dimension_semantics<parallel>, #tpu.dimension_semantics<arbitrary>], iteration_bounds = array<i64: 4, 1>, scalar_prefetch = 0 : i64, scratch_operands = 1 : i64, tpu.core_type = #tpu.core_type<tc>, window_params = [{transform_indices = @transform_0, window_bounds = array<i64: 1, 8, 128>}, {transform_indices = @transform_1, window_bounds = array<i64: 1, 128, 128>}, {transform_indices = @transform_2, window_bounds = array<i64: 1, 1, 128>}, {transform_indices = @transform_3, window_bounds = array<i64: 1, 128, 128>}, {transform_indices = @transform_4, window_bounds = array<i64: 1, 1, 128>}, {transform_indices = @transform_5, window_bounds = array<i64: 1, 8, 128>}]} {
    %c0_i32 = arith.constant 0 : i32
    %0 = arith.cmpi eq, %arg1, %c0_i32 : i32
    %1 = arith.extui %0 : i1 to i32
    %c0_i32_0 = arith.constant 0 : i32
    %2 = arith.cmpi ne, %1, %c0_i32_0 : i32
    scf.if %2 {
      %c0_10 = arith.constant 0 : index
      %c0_11 = arith.constant 0 : index
      %c0_12 = arith.constant 0 : index
      %18 = vector.load %arg2[%c0_10, %c0_11, %c0_12] : memref<1x8x128xbf16, #tpu.memory_space<vmem>>, vector<1x8x128xbf16>
      %19 = vector.shape_cast %18 : vector<1x8x128xbf16> to vector<8x128xbf16>
      %c0_13 = arith.constant 0 : index
      %c0_14 = arith.constant 0 : index
      %c0_15 = arith.constant 0 : index
      %20 = vector.load %arg3[%c0_13, %c0_14, %c0_15] : memref<1x128x128xbf16, #tpu.memory_space<vmem>>, vector<1x128x128xbf16>
      %21 = vector.shape_cast %20 : vector<1x128x128xbf16> to vector<128x128xbf16>
      %cst_16 = arith.constant dense<0.000000e+00> : vector<8x128xf32>
      %22 = tpu.matmul %19, %21, %cst_16 {dimension_numbers = #tpu.dot_dimension_numbers<[1], [0], [0], [1], [0, 0, 1, 1], [], []>} : vector<8x128xbf16>, vector<128x128xbf16>, vector<8x128xf32> -> vector<8x128xf32>
      %c0_17 = arith.constant 0 : index
      %c0_18 = arith.constant 0 : index
      %c0_19 = arith.constant 0 : index
      %23 = vector.load %arg4[%c0_17, %c0_18, %c0_19] : memref<1x1x128xf32, #tpu.memory_space<vmem>>, vector<1x1x128xf32>
      %24 = vector.shape_cast %23 : vector<1x1x128xf32> to vector<1x128xf32>
      %25 = vector.broadcast %24 : vector<1x128xf32> to vector<8x128xf32>
      %26 = arith.addf %22, %25 : vector<8x128xf32>
      %27 = math.tanh %26 : vector<8x128xf32>
      %c0_20 = arith.constant 0 : index
      %c0_21 = arith.constant 0 : index
      %28 = vector.load %arg8[%c0_20, %c0_21] : memref<8x128xf32, #tpu.memory_space<vmem>>, vector<8x128xf32>
      tpu.vector_store %arg8[%c0_20, %c0_21], %27 {strides = array<i32>} : memref<8x128xf32, #tpu.memory_space<vmem>>, vector<8x128xf32>,
    } else {
    }
    %c0 = arith.constant 0 : index
    %c0_1 = arith.constant 0 : index
    %3 = vector.load %arg8[%c0, %c0_1] : memref<8x128xf32, #tpu.memory_space<vmem>>, vector<8x128xf32>
    %4 = arith.truncf %3 : vector<8x128xf32> to vector<8x128xbf16>
    %c0_2 = arith.constant 0 : index
    %c0_3 = arith.constant 0 : index
    %c0_4 = arith.constant 0 : index
    %5 = vector.load %arg5[%c0_2, %c0_3, %c0_4] : memref<1x128x128xbf16, #tpu.memory_space<vmem>>, vector<1x128x128xbf16>
    %6 = vector.shape_cast %5 : vector<1x128x128xbf16> to vector<128x128xbf16>
    %cst = arith.constant dense<0.000000e+00> : vector<8x128xf32>
    %7 = tpu.matmul %4, %6, %cst {dimension_numbers = #tpu.dot_dimension_numbers<[1], [0], [0], [1], [0, 0, 1, 1], [], []>} : vector<8x128xbf16>, vector<128x128xbf16>, vector<8x128xf32> -> vector<8x128xf32>
    %c0_5 = arith.constant 0 : index
    %c0_6 = arith.constant 0 : index
    %c0_7 = arith.constant 0 : index
    %8 = vector.load %arg6[%c0_5, %c0_6, %c0_7] : memref<1x1x128xf32, #tpu.memory_space<vmem>>, vector<1x1x128xf32>
    %9 = vector.shape_cast %8 : vector<1x1x128xf32> to vector<1x128xf32>
    %10 = vector.broadcast %9 : vector<1x128xf32> to vector<8x128xf32>
    %11 = arith.addf %7, %10 : vector<8x128xf32>
    %c2_i32 = arith.constant 2 : i32
    %12 = arith.cmpi sge, %arg0, %c2_i32 : i32
    %13 = arith.extui %12 : i1 to i32
    %c0_i32_8 = arith.constant 0 : i32
    %14 = arith.cmpi ne, %13, %c0_i32_8 : i32
    scf.if %14 {
      %18 = arith.negf %11 : vector<8x128xf32>
      %19 = math.exp %18 : vector<8x128xf32>
      %cst_10 = arith.constant 1.000000e+00 : f32
      %20 = vector.broadcast %cst_10 : f32 to vector<8x128xf32>
      %21 = arith.addf %20, %19 : vector<8x128xf32>
      %22 = arith.divf %20, %21 : vector<8x128xf32>
      %c0_11 = arith.constant 0 : index
      %c0_12 = arith.constant 0 : index
      %c0_13 = arith.constant 0 : index
      %23 = vector.load %arg7[%c0_11, %c0_12, %c0_13] : memref<1x8x128xf32, #tpu.memory_space<vmem>>, vector<1x8x128xf32>
      %24 = vector.shape_cast %23 : vector<1x8x128xf32> to vector<8x128xf32>
      %25 = vector.shape_cast %22 : vector<8x128xf32> to vector<1x8x128xf32>
      tpu.vector_store %arg7[%c0_11, %c0_12, %c0_13], %25 {strides = array<i32>} : memref<1x8x128xf32, #tpu.memory_space<vmem>>, vector<1x8x128xf32>,
    } else {
    }
    %true = arith.constant true
    %15 = arith.xori %12, %true : i1
    %16 = arith.extui %15 : i1 to i32
    %c0_i32_9 = arith.constant 0 : i32
    %17 = arith.cmpi ne, %16, %c0_i32_9 : i32
    scf.if %17 {
      %c0_10 = arith.constant 0 : index
      %c0_11 = arith.constant 0 : index
      %c0_12 = arith.constant 0 : index
      %18 = vector.load %arg7[%c0_10, %c0_11, %c0_12] : memref<1x8x128xf32, #tpu.memory_space<vmem>>, vector<1x8x128xf32>
      %19 = vector.shape_cast %18 : vector<1x8x128xf32> to vector<8x128xf32>
      %20 = vector.shape_cast %11 : vector<8x128xf32> to vector<1x8x128xf32>
      tpu.vector_store %arg7[%c0_10, %c0_11, %c0_12], %20 {strides = array<i32>} : memref<1x8x128xf32, #tpu.memory_space<vmem>>, vector<1x8x128xf32>,
    } else {
    }
    return
  }
  func.func @transform_0(%arg0: i32, %arg1: i32) -> (i32, i32, i32) {
    %c0_i32 = arith.constant 0 : i32
    %c0_i32_0 = arith.constant 0 : i32
    %c0_i32_1 = arith.constant 0 : i32
    return %arg0, %c0_i32, %c0_i32_0 : i32, i32, i32
  }
  func.func @transform_1(%arg0: i32, %arg1: i32) -> (i32, i32, i32) {
    %c0_i32 = arith.constant 0 : i32
    %c0_i32_0 = arith.constant 0 : i32
    %c0_i32_1 = arith.constant 0 : i32
    return %arg0, %c0_i32, %c0_i32_0 : i32, i32, i32
  }
  func.func @transform_2(%arg0: i32, %arg1: i32) -> (i32, i32, i32) {
    %c0_i32 = arith.constant 0 : i32
    %c0_i32_0 = arith.constant 0 : i32
    %c0_i32_1 = arith.constant 0 : i32
    return %arg0, %c0_i32, %c0_i32_0 : i32, i32, i32
  }
  func.func @transform_3(%arg0: i32, %arg1: i32) -> (i32, i32, i32) {
    %c0_i32 = arith.constant 0 : i32
    %c0_i32_0 = arith.constant 0 : i32
    return %arg0, %c0_i32, %arg1 : i32, i32, i32
  }
  func.func @transform_4(%arg0: i32, %arg1: i32) -> (i32, i32, i32) {
    %c0_i32 = arith.constant 0 : i32
    %c0_i32_0 = arith.constant 0 : i32
    return %arg0, %c0_i32, %arg1 : i32, i32, i32
  }
  func.func @transform_5(%arg0: i32, %arg1: i32) -> (i32, i32, i32) {
    %c0_i32 = arith.constant 0 : i32
    %c0_i32_0 = arith.constant 0 : i32
    return %arg0, %c0_i32, %arg1 : i32, i32, i32
  }
}

</mosaic_0001>

<bundles_post_ra>
// kernel: tpu_custom_call.1
= control target key start
LH: loop header
LB: loop body
LE: loop exit
PB: predicated region body
PF: predicated region fallthrough
CT: control target
= control target key end

     0   :  { %s1499_s0 = inlined_call_operand.hbm [shape: bf16[4,8,128], index: 0, kind: input, shape index: {}]   ;;  %s1500_s1 = inlined_call_operand.hbm [shape: bf16[4,128,128], index: 1, kind: input, shape index: {}]   ;;  %s1501_s2 = inlined_call_operand.hbm [shape: f32[4,1,128], index: 2, kind: input, shape index: {}]   ;;  %s1502_s3 = inlined_call_operand.hbm [shape: bf16[4,128,128], index: 3, kind: input, shape index: {}]   ;;  %s1503_s4 = inlined_call_operand.vmem [shape: f32[4,1,128], index: 4, kind: input, shape index: {}]   ;;  %s1504_s5 = inlined_call_operand.hbm [shape: f32[4,8,128], index: 5, kind: output, shape index: {}]  }
   0x1   :  { %1511 = sst [smem:[#allocation20_spill]] %s1500_s1 }
   0x2   :  { %10 = vsyncpa [#allocation4], 0 }
   0x3   :  { %12 = vsyncpa [#allocation4 + $0x1], 0 }
   0x4   :  { %13 = vsyncpa [#allocation7], 0 }
   0x5   :  { %15 = vsyncpa [#allocation7 + $0x1], 0 }
   0x6   :  { %16 = vsyncpa [#allocation10], 0 }
   0x7   :  { %18 = vsyncpa [#allocation10 + $0x1], 0 }
   0x8   :  { %19 = vsyncpa [#allocation5], 0 }
   0x9   :  { %21 = vsyncpa [#allocation5 + $0x1], 0  ;;  %s1259_s18 = smov 0   ;;  %s1261_s19 = smov 0  }
   0xa   :  { %s1263_s20 = smov 0   ;;  %s1265_s21 = smov 0  }
   0xb   :  { %s1267_s22 = smov 0   ;;  %s1269_s23 = smov 0  }
   0xc LB: > { %1512 = sst [smem:[#allocation16_spill]] %s1206_s20  ;;  %s1290_s24 = sadd.s32 4294967295, %s1218_s23   ;;  %s1218_s23 = sphi %s1269_s23, %s27_s23   ;;  %s1214_s22 = sphi %s1267_s22, %s1533_s22   ;;  %s1210_s21 = sphi %s1265_s21, %s1532_s21   ;;  %s1206_s20 = sphi %s1263_s20, %s1528_s20   ;;  %s1202_s19 = sphi %s1261_s19, %s1531_s19   ;;  %s1198_s18 = sphi %s1259_s18, %s1530_s18  }
   0xd   : > { %s813_s25 = sadd.s32 4294967294, %s1218_s23   ;;  %s39_s26 = sadd.s32 1, %s1214_s22 }
   0xe   : > { %s46_s27 = sadd.s32 1, %s1206_s20  ;;  %p41_p0 = scmp.ge.s32.totalorder %s39_s26, 4 }
   0xf   : > { %p53_p1 = scmp.ne.s32.totalorder %s1206_s20, %s1202_s19  ;;  %p54_p2 = scmp.eq.s32.totalorder %s1218_s23, 0 }
  0x10   : > { %p59_p3 = scmp.ne.s32.totalorder %s1202_s19, %s1198_s18  ;;  %s1535_s26 = smov (%p41_p0, %s39_s26), 0 }
  0x11   : > { %1513 = sst [smem:[#allocation17_spill]] %s1535_s26  ;;  %p1302_p4 = por %p54_p2, %p53_p1 }
  0x12   : > { %p60_p5 = scmp.eq.s32.totalorder %s1290_s24, 0  ;;  %s43_s29 = ssub.s32 %s1214_s22, %s1535_s26 }
  0x13   : > { %p193_p6 = scmp.eq.s32.totalorder %s1290_s24, 3  ;;  %p44_p7 = scmp.eq.s32.totalorder %s43_s29, 0 }
  0x14   : > { %p1310_p8 = por %p60_p5, %p59_p3  ;;  %p199_p10 = scmp.eq.s32.totalorder %s813_s25, 3 }
  0x15   : > { %p1314_p9 = por %p193_p6, %p53_p1  ;;  %p942_p12 = scmp.lt.s32.totalorder %s1218_s23, 4 }
  0x16   : > { %s1319_s7 = scalar_select %p44_p7, %s1206_s20, %s46_s27  }
  0x17   : > { %p1321_p11 = por %p199_p10, %p59_p3  ;;  %s1327_s9 = sand.u32 1, %s1206_s20  }
  0x18   : > { %1517 = sst [smem:[#allocation18_spill]] %s1319_s7  ;;  %s237_s10 = sand.u32 1, %s1218_s23  }
  0x19   : > { %s1518_s8 = scalar_select %p1321_p11, 1, 0 }
  0x1a   : > { %s1506_s11 = sshll.u32 %s1327_s9, 6  ;;  %p1333_p13 = pnand %p942_p12, %p1302_p4 }
  0x1b   : > { %1519 = sst [smem:[#allocation19_spill]] %s1518_s8  ;;  %s1507_s13 = sshll.u32 %s1214_s22, 10 }
  0x1c   : > { %s1521_s1 = sld [smem:[#allocation20_spill]]  ;;  %s241_s17 = scalar_lea.vmem [#allocation6], %s1506_s11 }
  0x1d   : > { %s248_s25 = sshll.u32 %s241_s17, 4  ;;  %s1345_s27 = scalar_lea.sflag [#allocation7], %s237_s10  ;;  %s249_s25 = int_to_ptr.vmem [resolvable:$true] %s248_s25 }
  0x1e   : > { %p1020_p0 = pneg %p1333_p13  ;;  %s1031_s28 = scalar_lea.vmem %s249_s25, 1024 }
  0x1f   : > { %p1032_p1 = scmp.ne.s32.totalorder %s249_s25, %s1031_s28  ;;  %s1220_s29 = smov [#allocation6]  }
  0x20   : > { %s1036_s26 = sshll.u32 %s1220_s29, 4  ;;  %s1037_s26 = int_to_ptr.vmem [resolvable:$false] %s1036_s26 }
  0x21   : > { %p1034_p2 = pnand %p1032_p1, %p1020_p0  ;;  %s1038_s7 = scalar_lea.vmem %s1037_s26, 2048 }
  0x22   : > { %s247_s16 = scalar_lea.hbm %s1521_s1, %s1507_s13  ;;  %p1039_p4 = scmp.lt.s32.totalorder %s249_s25, %s1037_s26 }
  0x23   : > { %p1035_p3 = pneg %p1034_p2  ;;  %p1040_p5 = scmp.lt.s32.totalorder %s1038_s7, %s1031_s28 }
  0x25   : > { %p1041_p6 = por %p1040_p5, %p1039_p4 }
  0x27   : > { %p1042_p7 = pnand %p1041_p6, %p1035_p3 }
  0x29   : > { %1045 = shalt.err (!%p1042_p7)
}
  0x2a   : > { %s1510_s14 = smov 64   ;;  %s1222_s10 = smov 4  }
  0x2b   : > { %931 = dma.hbm_to_vmem [thread:$0]  (!%p1333_p13), %s247_s16, 1024, %s249_s25, %s1345_s27, %s1510_s14, %s1510_s14, %s1222_s10  }
  0x2c   : > { %p825_p10 = scmp.ge.s32.totalorder %s1218_s23, 1  ;;  %p304_p12 = scmp.lt.s32.totalorder %s1218_s23, 5 }
  0x2d   : > { %s816_s7 = sshll.u32 %s1327_s9, 2  ;;  %s817_s15 = sshll.u32 %s1214_s22, 6 }
  0x2e   : > { %p1360_p1 = pnand %p825_p10, %p304_p12  ;;  %s228_s29 = scalar_lea.hbm %s1499_s0, %s817_s15 }
  0x2f   : > { %s223_s11 = scalar_lea.vmem [#allocation3], %s816_s7  ;;  %s821_s1 = sshll.u32 %s1214_s22, 4 }
  0x30   : > { %s230_s13 = sshll.u32 %s223_s11, 4  ;;  %s220_s20 = scalar_lea.sflag [#allocation4], %s1327_s9  ;;  %s231_s13 = int_to_ptr.vmem [resolvable:$true] %s230_s13 }
  0x31   : > { %s1059_s8 = scalar_lea.vmem %s231_s13, 64  ;;  %s1223_s16 = smov [#allocation3]  }
  0x32   : > { %p1060_p2 = scmp.ne.s32.totalorder %s231_s13, %s1059_s8  ;;  %s1064_s25 = sshll.u32 %s1223_s16, 4  ;;  %s1065_s25 = int_to_ptr.vmem [resolvable:$false] %s1064_s25 }
  0x33   : > { %s1066_s14 = scalar_lea.vmem %s1065_s25, 128  ;;  %p1067_p5 = scmp.lt.s32.totalorder %s231_s13, %s1065_s25 }
  0x34   : > { %p1062_p3 = pnand %p1060_p2, %p1020_p0  ;;  %p1068_p6 = scmp.lt.s32.totalorder %s1066_s14, %s1059_s8 }
  0x36   : > { %p1063_p4 = pneg %p1062_p3  ;;  %p1069_p7 = por %p1068_p6, %p1067_p5 }
  0x38   : > { %p1070_p10 = pnand %p1069_p7, %p1063_p4 }
  0x3a   : > { %1073 = shalt.err (!%p1070_p10)
}
  0x3b   : > { %928 = dma.hbm_to_vmem [thread:$0]  (!%p1333_p13), %s228_s29, 64, %s231_s13, %s220_s20  }
  0x3c   : > { %s266_s15 = scalar_lea.hbm %s1501_s2, %s821_s1  ;;  %s261_s17 = scalar_lea.vmem [#allocation8], %s1327_s9 }
  0x3d   : > { %s268_s28 = sshll.u32 %s261_s17, 4  ;;  %s1224_s8 = smov [#allocation8]   ;;  %s269_s28 = int_to_ptr.vmem [resolvable:$true] %s268_s28 }
  0x3e   : > { %s1087_s16 = scalar_lea.vmem %s269_s28, 16  ;;  %s1092_s14 = sshll.u32 %s1224_s8, 4  ;;  %s1093_s14 = int_to_ptr.vmem [resolvable:$false] %s1092_s14 }
  0x3f   : > { %p1088_p12 = scmp.ne.s32.totalorder %s269_s28, %s1087_s16  ;;  %s1094_s25 = scalar_lea.vmem %s1093_s14, 32 }
  0x40   : > { %p1095_p4 = scmp.lt.s32.totalorder %s269_s28, %s1093_s14  ;;  %p1096_p5 = scmp.lt.s32.totalorder %s1094_s25, %s1087_s16 }
  0x41   : > { %p1090_p2 = pnand %p1088_p12, %p1020_p0 }
  0x42   : > { %p1097_p6 = por %p1096_p5, %p1095_p4 }
  0x43   : > { %p1091_p3 = pneg %p1090_p2 }
  0x45   : > { %p1098_p7 = pnand %p1097_p6, %p1091_p3 }
  0x47   : > { %1101 = shalt.err (!%p1098_p7)
}
  0x48   : > { %934 = dma.hbm_to_vmem [thread:$0]  (!%p1333_p13), %s266_s15, 16, %s269_s28, %s1345_s27  }
  0x49   : > { %s1523_s1 = sshll.u32 %s1214_s22, 10  ;;  %s1524_s11 = sshll.u32 %s1327_s9, 6 }
  0x4a   : > { %s286_s29 = scalar_lea.hbm %s1502_s3, %s1523_s1  ;;  %s279_s7 = scalar_lea.vmem [#allocation9], %s1524_s11 }
  0x4b   : > { %s287_s17 = sshll.u32 %s279_s7, 4  ;;  %s276_s16 = scalar_lea.sflag [#allocation10], %s1327_s9  ;;  %s288_s17 = int_to_ptr.vmem [resolvable:$true] %s287_s17 }
  0x4c   : > { %s1115_s8 = scalar_lea.vmem %s288_s17, 1024  ;;  %s1225_s14 = smov [#allocation9]  }
  0x4d   : > { %p1116_p10 = scmp.ne.s32.totalorder %s288_s17, %s1115_s8  ;;  %s1120_s25 = sshll.u32 %s1225_s14, 4  ;;  %s1121_s25 = int_to_ptr.vmem [resolvable:$false] %s1120_s25 }
  0x4e   : > { %s1122_s27 = scalar_lea.vmem %s1121_s25, 2048  ;;  %p1123_p3 = scmp.lt.s32.totalorder %s288_s17, %s1121_s25 }
  0x4f   : > { %p1118_p12 = pnand %p1116_p10, %p1020_p0  ;;  %p1124_p4 = scmp.lt.s32.totalorder %s1122_s27, %s1115_s8 }
  0x51   : > { %p1119_p2 = pneg %p1118_p12  ;;  %p1125_p5 = por %p1124_p4, %p1123_p3 }
  0x53   : > { %p1126_p6 = pnand %p1125_p5, %p1119_p2 }
  0x55   : > { %1129 = shalt.err (!%p1126_p6)
}
  0x56   : > { %s1525_s15 = smov 64   ;;  %308 = sbr.rel (%p1360_p1) target bundleno = 606 (0x25e), region = 40 }
  0x57   : > { %937 = dma.hbm_to_vmem [thread:$0]  (!%p1333_p13), %s286_s29, 1024, %s288_s17, %s276_s16, %s1525_s15, %s1525_s15, %s1222_s10  }
  0x58   : > { %s1405_s9 = sand.u32 (!%p1360_p1), 1, %s1202_s19  }
  0x59   : > { %s826_s28 = sshll.u32 (!%p1360_p1), %s1405_s9, 2  ;;  %s311_s1 = scalar_lea.sflag (!%p1360_p1), [#allocation4], %s1405_s9 }
  0x5a   : > { %s1409_s20 = scalar_lea.vmem (!%p1360_p1), [#allocation3], %s826_s28 }
  0x5b   : > { %1181 = dma.done.wait (%p1310_p8), %s311_s1, 64  }
  0x5c   : > { %1183 = vsyncadd (%p1310_p8), %s311_s1, 4294967232  ;;  %s319_s12 = sand.u32 1, %s1290_s24   ;;  %s827_s10 = sshll.u32 %s1405_s9, 6 }
  0x5d   : > { %s320_s26 = scalar_lea.sflag [#allocation7], %s319_s12  ;;  %s1417_s13 = scalar_lea.vmem [#allocation6], %s827_s10 }
  0x5e   : > { %1185 = dma.done.wait (%p1310_p8), %s320_s26, 1040  }
  0x5f   : > { %1187 = vsyncadd (%p1310_p8), %s320_s26, 4294966256  ;;  %s331_s29 = scalar_lea.vmem [#allocation8], %s1405_s9  ;;  %s337_s11 = scalar_lea.sflag [#allocation10], %s1405_s9 }
  0x60   : > { %s1425_s7 = scalar_lea.vmem [#allocation9], %s827_s10 }
  0x61   : > { %1189 = dma.done.wait (%p1310_p8), %s337_s11, 1024  }
  0x62   : > { %1191 = vsyncadd (%p1310_p8), %s337_s11, 4294966272  ;;  %s829_s24 = sshll.u32 %s1405_s9, 3  ;;  %v1226_v0 = vmov 0.0   ;;  %vm1227_vm0 = vmmov 0   ;;  %v996_v1 = vld [vmem:[%s1417_s13 + $0x38] sm:$0xff]   ;;  %v997_v2 = vld [vmem:[%s1417_s13 + $0x30] sm:$0xff]  }
  0x63   : > { %875 = vmatprep.subr.bf16.mxu0 %v1226_v0  ;;  %891 = vmatprep.mubr.msk.bf16.mxu0 %vm1227_vm0, %v1226_v0  ;;  %v998_v3 = vld [vmem:[%s1417_s13 + $0x28] sm:$0xff]   ;;  %v1004_v4 = vld [vmem:[%s1425_s7 + $0x38] sm:$0xff]   ;;  %v1005_v6 = vld [vmem:[%s1425_s7 + $0x30] sm:$0xff]   ;;  %p387_p8 = scmp.lt.s32.totalorder %s1210_s21, 3  ;;  %s386_s14 = scalar_lea.vmem [#allocation11], %s829_s24 }
  0x64   : > { %895 = vmatprep.subr.bf16.mxu1 %v1226_v0  ;;  %911 = vmatprep.mubr.msk.bf16.mxu1 %vm1227_vm0, %v1226_v0  ;;  %v999_v5 = vld [vmem:[%s1417_s13 + $0x20] sm:$0xff]   ;;  %v1000_v7 = vld [vmem:[%s1417_s13 + $0x18] sm:$0xff]   ;;  %v1006_v8 = vld [vmem:[%s1425_s7 + $0x28] sm:$0xff]   ;;  %p848_p13 = scmp.lt.s32.totalorder %s1210_s21, 2 }
  0x65   : > { %876 = vmatpush3.bf16.msra.mxu0 %v996_v1  ;;  %896 = vmatpush3.bf16.msra.mxu1 %v1004_v4  ;;  %v1001_v9 = vld [vmem:[%s1417_s13 + $0x10] sm:$0xff]   ;;  %v1002_v10 = vld [vmem:[%s1417_s13 + $0x8] sm:$0xff]   ;;  %v1003_v11 = vld [vmem:[%s1417_s13] sm:$0xff]   ;;  %s388_s30 = scalar_select %p387_p8, %s1210_s21, 3 }
  0x66   : > { %877 = vmatprep.subr.bf16.mxu0 %v1226_v0  ;;  %897 = vmatprep.subr.bf16.mxu1 %v1226_v0  ;;  %v398_v12 = vld [vmem:[%s1409_s20] sm:$0xf]  ;;  %v1007_v13 = vld [vmem:[%s1425_s7 + $0x20] sm:$0xff]   ;;  %v1010_v16 = vld [vmem:[%s1425_s7 + $0x8] sm:$0xff]  }
  0x67   : > { %v1008_v14 = vld [vmem:[%s1425_s7 + $0x18] sm:$0xff]   ;;  %v1009_v15 = vld [vmem:[%s1425_s7 + $0x10] sm:$0xff]   ;;  %v1011_v17 = vld [vmem:[%s1425_s7] sm:$0xff]   ;;  %s392_s8 = scalar_lea.vmem %s1503_s4, %s388_s30 }
  0x68   : > { %v830_v18 = vld [vmem:[%s331_s29] ss:$0 sm:$0xff] }
  0x69   : > { %878 = vmatpush3.bf16.msra.mxu0 %v997_v2  ;;  %898 = vmatpush3.bf16.msra.mxu1 %v1005_v6  ;;  %v839_v26 = vld [vmem:[%s392_s8] ss:$0 sm:$0xff] }
  0x6a   : > { %879 = vmatprep.subr.bf16.mxu0 %v1226_v0  ;;  %899 = vmatprep.subr.bf16.mxu1 %v1226_v0 }
  0x6d   : > { %880 = vmatpush3.bf16.msra.mxu0 %v998_v3  ;;  %900 = vmatpush3.bf16.msra.mxu1 %v1006_v8 }
  0x6e   : > { %881 = vmatprep.subr.bf16.mxu0 %v1226_v0  ;;  %901 = vmatprep.subr.bf16.mxu1 %v1226_v0 }
  0x71   : > { %882 = vmatpush3.bf16.msra.mxu0 %v999_v5  ;;  %902 = vmatpush3.bf16.msra.mxu1 %v1007_v13 }
  0x72   : > { %883 = vmatprep.subr.bf16.mxu0 %v1226_v0  ;;  %903 = vmatprep.subr.bf16.mxu1 %v1226_v0 }
  0x75   : > { %884 = vmatpush3.bf16.msra.mxu0 %v1000_v7  ;;  %904 = vmatpush3.bf16.msra.mxu1 %v1008_v14 }
  0x76   : > { %885 = vmatprep.subr.bf16.mxu0 %v1226_v0  ;;  %905 = vmatprep.subr.bf16.mxu1 %v1226_v0 }
  0x79   : > { %886 = vmatpush3.bf16.msra.mxu0 %v1001_v9  ;;  %906 = vmatpush3.bf16.msra.mxu1 %v1009_v15 }
  0x7a   : > { %887 = vmatprep.subr.bf16.mxu0 %v1226_v0  ;;  %907 = vmatprep.subr.bf16.mxu1 %v1226_v0 }
  0x7d   : > { %888 = vmatpush3.bf16.msra.mxu0 %v1002_v10  ;;  %908 = vmatpush3.bf16.msra.mxu1 %v1010_v16 }
  0x7e   : > { %889 = vmatprep.subr.bf16.mxu0 %v1226_v0  ;;  %909 = vmatprep.subr.bf16.mxu1 %v1226_v0 }
  0x81   : > { %890 = vmatpush3.bf16.msra.mxu0 %v1003_v11  ;;  %910 = vmatpush3.bf16.msra.mxu1 %v1011_v17 }
  0x84   : > { %892 = vmatmul.mubr.bf16.vlgmr.msra.gmra.mxu0 %v398_v12 }
 0x144   : > { %v504_v19 = vpop.f32.mrf.mxu0 }
 0x145   : > { %v505_v20 = vadd.f32 %v830_v18, %v504_v19 }
 0x146   : > { %v893_v21 = vpop.f32.mrf.mxu0 }
 0x147   : > { %1012 = vtanh.f32 %v505_v20 }
 0x148   : > { %v507_v22 = vpop.f32.mrf.mxu0 }
 0x14a   : > { %v894_v23 = vpop.f32.mrf.mxu0 }
 0x154   : > { %v1013_v24 = vpop.eup %1012 }
 0x155   : > { %v513_v25 = vpack.c.bf16 %v1013_v24, %v1013_v24 }
 0x157   : > { %912 = vmatmul.mubr.bf16.vlgmr.msra.gmra.mxu1 %v513_v25 }
 0x217   : > { %v619_v27 = vpop.f32.mrf.mxu1 }
 0x218   : > { %v620_v28 = vadd.f32 %v839_v26, %v619_v27 }
 0x219   : > { %v913_v29 = vpop.f32.mrf.mxu1  ;;  %628 = sbr.rel (%p848_p13) target bundleno = 575 (0x23f), region = 64 }
 0x21b   : > { %v622_v30 = vpop.f32.mrf.mxu1 }
 0x21d   : > { %v914_v31 = vpop.f32.mrf.mxu1 }
 0x21e   : > { %v849_v32 = vmul.f32 -1.442695, %v620_v28 }
 0x220   : > { %1014 = vpow2.f32 %v849_v32 }
 0x22d   : > { %v1015_v33 = vpop.eup %1014 }
 0x22e   : > { %v632_v34 = vadd.f32 1.0, %v1015_v33 }
 0x230   : > { %1016 = vrcp.f32 %v632_v34 }
 0x23d   : > { %v1017_v35 = vpop.eup %1016 }
 0x23e   : > { %635 = vst [vmem:[%s386_s14] sm:$0xff] %v1017_v35 }
 0x23f PF: > { %p850_p0 = scmp.ge.s32.totalorder %s1210_s21, 2 }
 0x241   : > { %639 = sbr.rel (%p850_p0) target bundleno = 583 (0x247), region = 68 }
 0x246   : > { %640 = vst [vmem:[%s386_s14] sm:$0xff] %v620_v28 }
 0x247 PF: > { %s852_s25 = sshll.u32 %s1210_s21, 7  ;;  %s656_s1 = sshll.u32 %s386_s14, 4  ;;  %s657_s1 = int_to_ptr.vmem [resolvable:$true] %s656_s1 }
 0x248   : > { %s654_s28 = scalar_lea.hbm %s1504_s5, %s852_s25  ;;  %s642_s20 = scalar_lea.sflag [#allocation5], %s1405_s9 }
 0x249   : > { %s1130_s12 = scalar_lea.vmem %s657_s1, 128  ;;  %s1228_s10 = smov [#allocation11]  }
 0x24a   : > { %p1131_p1 = scmp.ne.s32.totalorder %s657_s1, %s1130_s12  ;;  %s1134_s26 = sshll.u32 %s1228_s10, 4  ;;  %s1135_s26 = int_to_ptr.vmem [resolvable:$false] %s1134_s26 }
 0x24b   : > { %s1136_s13 = scalar_lea.vmem %s1135_s26, 256  ;;  %p1137_p12 = scmp.lt.s32.totalorder %s657_s1, %s1135_s26 }
 0x24c   : > { %p1132_p7 = pnand %p1131_p1, %p1314_p9  ;;  %p1138_p2 = scmp.lt.s32.totalorder %s1136_s13, %s1130_s12 }
 0x24e   : > { %p1133_p10 = pneg %p1132_p7  ;;  %p1139_p3 = por %p1138_p2, %p1137_p12 }
 0x250   : > { %p1140_p4 = pnand %p1139_p3, %p1133_p10 }
 0x252   : > { %1143 = shalt.err (!%p1140_p4)
}
 0x253   : > { %s1144_s21 = scalar_lea.hbm %s654_s28, 128  ;;  %s1148_s11 = scalar_lea.hbm %s1504_s5, 512 }
 0x254   : > { %p1145_p5 = scmp.ne.s32.totalorder %s654_s28, %s1144_s21  ;;  %p1149_p13 = scmp.lt.s32.totalorder %s654_s28, %s1504_s5 }
 0x255   : > { %p1150_p0 = scmp.lt.s32.totalorder %s1148_s11, %s1144_s21 }
 0x256   : > { %p1146_p6 = pnand %p1145_p5, %p1314_p9 }
 0x257   : > { %p1151_p1 = por %p1150_p0, %p1149_p13 }
 0x258   : > { %p1147_p8 = pneg %p1146_p6 }
 0x25a   : > { %p1152_p7 = pnand %p1151_p1, %p1147_p8 }
 0x25c   : > { %1155 = shalt.err (!%p1152_p7)
}
 0x25d   : > { %923 = dma.vmem_to_hbm [thread:$0]  (%p1314_p9), %s657_s1, 128, %s654_s28, %s642_s20  }
 0x25e PF: > { %p943_p10 = scmp.ge.s32.totalorder %s1218_s23, 2  ;;  %s668_s17 = sand.u32 1, %s1198_s18  }
 0x25f   : > { %s669_s16 = scalar_lea.sflag [#allocation5], %s668_s17 }
 0x260   : > { %p939_p12 = pnand %p943_p10, %p1321_p11 }
 0x262   : > { %p940_p2 = pneg %p939_p12 }
 0x264   : > { %1193 = dma.done.wait (%p940_p2), %s669_s16, 128  }
 0x265   : > { %1195 = vsyncadd (%p940_p2), %s669_s16, 4294967168  ;;  %s27_s23 = sadd.s32 1, %s1218_s23   ;;  %s1527_s8 = sld [smem:[#allocation16_spill]] }
 0x266   : > { %p24_p3 = scmp.ge.s32.totalorder %s27_s23, 6   ;;  %s1528_s20 = sld [smem:[#allocation18_spill]] }
 0x267   : > { %s1529_s6 = sld [smem:[#allocation17_spill]]  ;;  %s1530_s18 = smov %s1202_s19 }
 0x268   : > { %s1532_s21 = smov %s1214_s22 }
 0x269   :  { %26 = sbr.rel (!%p24_p3) target bundleno = 12 (0xc), region = 137 }
 0x26b   : > { %s1531_s19 = smov %s1527_s8 }
 0x26d   : > { %s1533_s22 = smov %s1529_s6 }
 0x26e   :  { %674 = vsyncpa [#allocation4], 1 }
 0x26f   :  { %676 = vsyncpa [#allocation4 + $0x1], 1 }
 0x270   :  { %677 = vsyncpa [#allocation7], 1 }
 0x271   :  { %679 = vsyncpa [#allocation7 + $0x1], 1 }
 0x272   :  { %680 = vsyncpa [#allocation10], 1 }
 0x273   :  { %682 = vsyncpa [#allocation10 + $0x1], 1 }
 0x274   :  { %683 = vsyncpa [#allocation5], 1 }
 0x275   :  { %685 = vsyncpa [#allocation5 + $0x1], 1 }

</bundles_post_ra>
